<compile_context>
chip_gen: v6e
topology: v6e:2x2x1
jax: 0.10.0
libtpu: 0.0.40
codegen_flags: <defaults>
</compile_context>

<pallas_src>
import functools

import jax
import jax.numpy as jnp
from jax import lax
from jax.experimental import pallas as pl
from jax.experimental.pallas import tpu as pltpu


def _fused_shapelet_kernel(xcol_ref, w_ref, b_ref, out_ref, carry_ref, *, tT):
    # xcol_ref : (tT, k_max*C)     im2col'd causal windows (batch dim squeezed by BlockSpec)
    # w_ref    : (k_max*C, O_pad)  fused per-tap weights (resident across the grid)
    # b_ref    : (1, O_pad)
    # out_ref  : (tT, O_pad)
    # carry_ref: VMEM (1, O_pad) f32 -- running max carried across time tiles of one sequence
    t = pl.program_id(1)

    @pl.when(t == 0)
    def _():
        carry_ref[...] = jnp.full(carry_ref.shape, -jnp.inf, dtype=carry_ref.dtype)

    # Causal conv for the whole time tile as a single MXU matmul (K = k_max*C).
    f = jnp.dot(xcol_ref[...], w_ref[...], preferred_element_type=jnp.float32)
    f = f + b_ref[...]                                   # broadcast (1, O_pad)
    out_ref[...] = f

    # In-tile inclusive prefix max: Hillis-Steele log-step scan, in place in VMEM.
    # Each step is a full-width vector max + store (no per-row masked stores).
    d = 1
    while d < tT:                                        # static unroll, log2(tT) steps
        out_ref[d:tT, :] = jnp.maximum(out_ref[d:tT, :], out_ref[0:tT - d, :])
        d *= 2

    # Fold in the carry from previous time tiles and update it for the next tile.
    res = jnp.maximum(out_ref[...], carry_ref[...])
    out_ref[...] = res
    carry_ref[...] = jnp.max(res, axis=0, keepdims=True)


def _choose_time_tile(T):
    for cand in (256, 128, 64, 32, 16, 8):
        if T % cand == 0:
            return cand
    return T  # fall back: whole sequence resident (block dim == full array dim is allowed)


def shapelet_blocks_forward(x, params, n_shapelets_per_size):
    """x: (N, C, T) float32 (torch NCW).  Returns (N, T, sum(n_shapelets))."""
    N, C, T = x.shape
    sizes = list(n_shapelets_per_size.items())
    k_max = max(k for k, _ in sizes)
    O_total = sum(O for _, O in sizes)
    O_pad = 128 * pl.cdiv(O_total, 128)
    kC = k_max * C

    # ---- fuse all blocks into one weight/bias (host-side, once per call) ----
    w_parts, b_parts = [], []
    for (k, O), (w, b) in zip(sizes, params):
        wt = jnp.transpose(w, (2, 1, 0))                         # (O, C, k) -> (k, C, O)
        wt = jnp.pad(wt, ((k_max - k, 0), (0, 0), (0, 0)))       # front-pad taps to k_max
        w_parts.append(wt)
        b_parts.append(b)
    w_full = jnp.concatenate(w_parts, axis=-1)                   # (k_max, C, O_total)
    b_full = jnp.concatenate(b_parts, axis=-1)                   # (O_total,)
    w_full = jnp.pad(w_full, ((0, 0), (0, 0), (0, O_pad - O_total)))
    b_full = jnp.pad(b_full, ((0, O_pad - O_total),))
    w_mat = w_full.reshape(kC, O_pad)                            # row index = tau*C + c
    b_mat = b_full.reshape(1, O_pad)

    # ---- host-side layout prep: causal pad by k_max + im2col to (N, T, k_max*C) ----
    xpad = jnp.pad(x, ((0, 0), (0, 0), (k_max, 0)))              # (N, C, T+k_max)
    xt = jnp.transpose(xpad, (0, 2, 1))                          # (N, T+k_max, C)
    xcol = jnp.concatenate([xt[:, tau:tau + T, :] for tau in range(k_max)], axis=-1)
    # xcol[n, j, tau*C + c] == xpad[n, c, j + tau]

    tT = _choose_time_tile(T)
    nT = T // tT

    kernel = functools.partial(_fused_shapelet_kernel, tT=tT)
    out = pl.pallas_call(
        kernel,
        out_shape=jax.ShapeDtypeStruct((N, T, O_pad), jnp.float32),
        grid_spec=pltpu.PrefetchScalarGridSpec(
            num_scalar_prefetch=0,
            grid=(N, nT),
            in_specs=[
                pl.BlockSpec((None, tT, kC), lambda n, t: (n, t, 0)),   # xcol, batch squeezed
                pl.BlockSpec((kC, O_pad), lambda n, t: (0, 0)),         # fused weights (resident)
                pl.BlockSpec((1, O_pad), lambda n, t: (0, 0)),          # fused bias (resident)
            ],
            out_specs=pl.BlockSpec((None, tT, O_pad), lambda n, t: (n, t, 0)),
            scratch_shapes=[pltpu.VMEM((1, O_pad), jnp.float32)],        # running-max carry
        ),
        compiler_params=pltpu.CompilerParams(
            dimension_semantics=("parallel", "arbitrary")),
    )(xcol, w_mat, b_mat)

    if O_pad != O_total:
        out = out[:, :, :O_total]
    return out


def _reference(x, params, n_shapelets_per_size):
    """Pure-JAX re-implementation of the PyTorch forward for validation."""
    N, C, T = x.shape
    outs = []
    for (k, O), (w, b) in zip(n_shapelets_per_size.items(), params):
        xpad = jnp.pad(x, ((0, 0), (0, 0), (k, 0)))
        win = jnp.stack([xpad[:, :, tau:tau + T] for tau in range(k)], axis=-1)  # (N,C,T,k)
        f = jnp.einsum('nctk,ock->not', win, w) + b[None, :, None]               # (N,O,T)
        cum = lax.cummax(f, axis=2)
        outs.append(jnp.transpose(cum, (0, 2, 1)))                               # (N,T,O)
    return jnp.concatenate(outs, axis=-1)


if __name__ == "__main__":
    # Small, deterministic setup (mirrors ShapeletBlocks(input_dim=C, {size: n_shapelets}))
    N, C, T = 2, 4, 16
    n_shapelets_per_size = {3: 4, 5: 8}

    key = jax.random.PRNGKey(0)
    key, kx = jax.random.split(key)
    x = jax.random.normal(kx, (N, C, T), dtype=jnp.float32)

    params = []
    for k_sz, O in n_shapelets_per_size.items():
        key, kw, kb = jax.random.split(key, 3)
        bound = 1.0 / float(C * k_sz) ** 0.5        # same scale as torch Conv1d default init
        w = jax.random.uniform(kw, (O, C, k_sz), minval=-bound, maxval=bound, dtype=jnp.float32)
        b = jax.random.uniform(kb, (O,), minval=-bound, maxval=bound, dtype=jnp.float32)
        params.append((w, b))

    out = shapelet_blocks_forward(x, params, n_shapelets_per_size)
    out = jax.block_until_ready(out)

    ref = _reference(x, params, n_shapelets_per_size)
    assert out.shape == (N, T, sum(n_shapelets_per_size.values())), out.shape
    err = float(jnp.max(jnp.abs(out - ref)))
    assert jnp.allclose(out, ref, atol=1e-5, rtol=1e-5), err

    print("KERNEL_OK")
</pallas_src>

<mosaic_0001>
module attributes {stable_mosaic.version = 11 : i64} {
  func.func @_fused_shapelet_kernel(%arg0: i32, %arg1: i32, %arg2: memref<1x16x20xf32, #tpu.memory_space<vmem>>, %arg3: memref<20x128xf32, #tpu.memory_space<vmem>>, %arg4: memref<1x128xf32, #tpu.memory_space<vmem>>, %arg5: memref<1x16x128xf32, #tpu.memory_space<vmem>>, %arg6: memref<1x128xf32, #tpu.memory_space<vmem>>) attributes {dimension_semantics = [#tpu.dimension_semantics<parallel>, #tpu.dimension_semantics<arbitrary>], iteration_bounds = array<i64: 2, 1>, scalar_prefetch = 0 : i64, scratch_operands = 1 : i64, tpu.core_type = #tpu.core_type<tc>, window_params = [{transform_indices = @transform_0, window_bounds = array<i64: 1, 16, 20>}, {pipeline_mode = #tpu.pipeline_mode<synchronous>, transform_indices = @transform_1, window_bounds = array<i64: 20, 128>}, {pipeline_mode = #tpu.pipeline_mode<synchronous>, transform_indices = @transform_2, window_bounds = array<i64: 1, 128>}, {transform_indices = @transform_3, window_bounds = array<i64: 1, 16, 128>}]} {
    %c0_i32 = arith.constant 0 : i32
    %0 = arith.cmpi eq, %arg1, %c0_i32 : i32
    %1 = arith.extui %0 : i1 to i32
    %c0_i32_0 = arith.constant 0 : i32
    %2 = arith.cmpi ne, %1, %c0_i32_0 : i32
    scf.if %2 {
      %cst_53 = arith.constant 0xFF800000 : f32
      %56 = vector.broadcast %cst_53 : f32 to vector<1x128xf32>
      %c0_54 = arith.constant 0 : index
      %c0_55 = arith.constant 0 : index
      %57 = vector.load %arg6[%c0_54, %c0_55] : memref<1x128xf32, #tpu.memory_space<vmem>>, vector<1x128xf32>
      tpu.vector_store %arg6[%c0_54, %c0_55], %56 {strides = array<i32>} : memref<1x128xf32, #tpu.memory_space<vmem>>, vector<1x128xf32>,
    } else {
    }
    %c0 = arith.constant 0 : index
    %c0_1 = arith.constant 0 : index
    %c0_2 = arith.constant 0 : index
    %3 = vector.load %arg2[%c0, %c0_1, %c0_2] : memref<1x16x20xf32, #tpu.memory_space<vmem>>, vector<1x16x20xf32>
    %4 = vector.shape_cast %3 : vector<1x16x20xf32> to vector<16x20xf32>
    %c0_3 = arith.constant 0 : index
    %c0_4 = arith.constant 0 : index
    %5 = vector.load %arg3[%c0_3, %c0_4] : memref<20x128xf32, #tpu.memory_space<vmem>>, vector<20x128xf32>
    %cst = arith.constant dense<0.000000e+00> : vector<16x128xf32>
    %6 = tpu.matmul %4, %5, %cst {dimension_numbers = #tpu.dot_dimension_numbers<[1], [0], [0], [1], [0, 0, 1, 1], [], []>} : vector<16x20xf32>, vector<20x128xf32>, vector<16x128xf32> -> vector<16x128xf32>
    %c0_5 = arith.constant 0 : index
    %c0_6 = arith.constant 0 : index
    %7 = vector.load %arg4[%c0_5, %c0_6] : memref<1x128xf32, #tpu.memory_space<vmem>>, vector<1x128xf32>
    %8 = vector.broadcast %7 : vector<1x128xf32> to vector<16x128xf32>
    %9 = arith.addf %6, %8 : vector<16x128xf32>
    %c0_7 = arith.constant 0 : index
    %c0_8 = arith.constant 0 : index
    %c0_9 = arith.constant 0 : index
    %10 = vector.load %arg5[%c0_7, %c0_8, %c0_9] : memref<1x16x128xf32, #tpu.memory_space<vmem>>, vector<1x16x128xf32>
    %11 = vector.shape_cast %10 : vector<1x16x128xf32> to vector<16x128xf32>
    %12 = vector.shape_cast %9 : vector<16x128xf32> to vector<1x16x128xf32>
    tpu.vector_store %arg5[%c0_7, %c0_8, %c0_9], %12 {strides = array<i32>} : memref<1x16x128xf32, #tpu.memory_space<vmem>>, vector<1x16x128xf32>,
    %c0_10 = arith.constant 0 : index
    %c1 = arith.constant 1 : index
    %c0_11 = arith.constant 0 : index
    %13 = vector.load %arg5[%c0_10, %c1, %c0_11] : memref<1x16x128xf32, #tpu.memory_space<vmem>>, vector<1x15x128xf32>
    %14 = vector.shape_cast %13 : vector<1x15x128xf32> to vector<15x128xf32>
    %c0_12 = arith.constant 0 : index
    %c0_13 = arith.constant 0 : index
    %c0_14 = arith.constant 0 : index
    %15 = vector.load %arg5[%c0_12, %c0_13, %c0_14] : memref<1x16x128xf32, #tpu.memory_space<vmem>>, vector<1x15x128xf32>
    %16 = vector.shape_cast %15 : vector<1x15x128xf32> to vector<15x128xf32>
    %17 = arith.maximumf %14, %16 : vector<15x128xf32>
    %c0_15 = arith.constant 0 : index
    %c1_16 = arith.constant 1 : index
    %c0_17 = arith.constant 0 : index
    %18 = vector.load %arg5[%c0_15, %c1_16, %c0_17] : memref<1x16x128xf32, #tpu.memory_space<vmem>>, vector<1x15x128xf32>
    %19 = vector.shape_cast %18 : vector<1x15x128xf32> to vector<15x128xf32>
    %20 = vector.shape_cast %17 : vector<15x128xf32> to vector<1x15x128xf32>
    tpu.vector_store %arg5[%c0_15, %c1_16, %c0_17], %20 {strides = array<i32>} : memref<1x16x128xf32, #tpu.memory_space<vmem>>, vector<1x15x128xf32>,
    %c0_18 = arith.constant 0 : index
    %c2 = arith.constant 2 : index
    %c0_19 = arith.constant 0 : index
    %21 = vector.load %arg5[%c0_18, %c2, %c0_19] : memref<1x16x128xf32, #tpu.memory_space<vmem>>, vector<1x14x128xf32>
    %22 = vector.shape_cast %21 : vector<1x14x128xf32> to vector<14x128xf32>
    %c0_20 = arith.constant 0 : index
    %c0_21 = arith.constant 0 : index
    %c0_22 = arith.constant 0 : index
    %23 = vector.load %arg5[%c0_20, %c0_21, %c0_22] : memref<1x16x128xf32, #tpu.memory_space<vmem>>, vector<1x14x128xf32>
    %24 = vector.shape_cast %23 : vector<1x14x128xf32> to vector<14x128xf32>
    %25 = arith.maximumf %22, %24 : vector<14x128xf32>
    %c0_23 = arith.constant 0 : index
    %c2_24 = arith.constant 2 : index
    %c0_25 = arith.constant 0 : index
    %26 = vector.load %arg5[%c0_23, %c2_24, %c0_25] : memref<1x16x128xf32, #tpu.memory_space<vmem>>, vector<1x14x128xf32>
    %27 = vector.shape_cast %26 : vector<1x14x128xf32> to vector<14x128xf32>
    %28 = vector.shape_cast %25 : vector<14x128xf32> to vector<1x14x128xf32>
    tpu.vector_store %arg5[%c0_23, %c2_24, %c0_25], %28 {strides = array<i32>} : memref<1x16x128xf32, #tpu.memory_space<vmem>>, vector<1x14x128xf32>,
    %c0_26 = arith.constant 0 : index
    %c4 = arith.constant 4 : index
    %c0_27 = arith.constant 0 : index
    %29 = vector.load %arg5[%c0_26, %c4, %c0_27] : memref<1x16x128xf32, #tpu.memory_space<vmem>>, vector<1x12x128xf32>
    %30 = vector.shape_cast %29 : vector<1x12x128xf32> to vector<12x128xf32>
    %c0_28 = arith.constant 0 : index
    %c0_29 = arith.constant 0 : index
    %c0_30 = arith.constant 0 : index
    %31 = vector.load %arg5[%c0_28, %c0_29, %c0_30] : memref<1x16x128xf32, #tpu.memory_space<vmem>>, vector<1x12x128xf32>
    %32 = vector.shape_cast %31 : vector<1x12x128xf32> to vector<12x128xf32>
    %33 = arith.maximumf %30, %32 : vector<12x128xf32>
    %c0_31 = arith.constant 0 : index
    %c4_32 = arith.constant 4 : index
    %c0_33 = arith.constant 0 : index
    %34 = vector.load %arg5[%c0_31, %c4_32, %c0_33] : memref<1x16x128xf32, #tpu.memory_space<vmem>>, vector<1x12x128xf32>
    %35 = vector.shape_cast %34 : vector<1x12x128xf32> to vector<12x128xf32>
    %36 = vector.shape_cast %33 : vector<12x128xf32> to vector<1x12x128xf32>
    tpu.vector_store %arg5[%c0_31, %c4_32, %c0_33], %36 {strides = array<i32>} : memref<1x16x128xf32, #tpu.memory_space<vmem>>, vector<1x12x128xf32>,
    %c0_34 = arith.constant 0 : index
    %c8 = arith.constant 8 : index
    %c0_35 = arith.constant 0 : index
    %37 = vector.load %arg5[%c0_34, %c8, %c0_35] : memref<1x16x128xf32, #tpu.memory_space<vmem>>, vector<1x8x128xf32>
    %38 = vector.shape_cast %37 : vector<1x8x128xf32> to vector<8x128xf32>
    %c0_36 = arith.constant 0 : index
    %c0_37 = arith.constant 0 : index
    %c0_38 = arith.constant 0 : index
    %39 = vector.load %arg5[%c0_36, %c0_37, %c0_38] : memref<1x16x128xf32, #tpu.memory_space<vmem>>, vector<1x8x128xf32>
    %40 = vector.shape_cast %39 : vector<1x8x128xf32> to vector<8x128xf32>
    %41 = arith.maximumf %38, %40 : vector<8x128xf32>
    %c0_39 = arith.constant 0 : index
    %c8_40 = arith.constant 8 : index
    %c0_41 = arith.constant 0 : index
    %42 = vector.load %arg5[%c0_39, %c8_40, %c0_41] : memref<1x16x128xf32, #tpu.memory_space<vmem>>, vector<1x8x128xf32>
    %43 = vector.shape_cast %42 : vector<1x8x128xf32> to vector<8x128xf32>
    %44 = vector.shape_cast %41 : vector<8x128xf32> to vector<1x8x128xf32>
    tpu.vector_store %arg5[%c0_39, %c8_40, %c0_41], %44 {strides = array<i32>} : memref<1x16x128xf32, #tpu.memory_space<vmem>>, vector<1x8x128xf32>,
    %c0_42 = arith.constant 0 : index
    %c0_43 = arith.constant 0 : index
    %c0_44 = arith.constant 0 : index
    %45 = vector.load %arg5[%c0_42, %c0_43, %c0_44] : memref<1x16x128xf32, #tpu.memory_space<vmem>>, vector<1x16x128xf32>
    %46 = vector.shape_cast %45 : vector<1x16x128xf32> to vector<16x128xf32>
    %c0_45 = arith.constant 0 : index
    %c0_46 = arith.constant 0 : index
    %47 = vector.load %arg6[%c0_45, %c0_46] : memref<1x128xf32, #tpu.memory_space<vmem>>, vector<1x128xf32>
    %48 = vector.broadcast %47 : vector<1x128xf32> to vector<16x128xf32>
    %49 = arith.maximumf %46, %48 : vector<16x128xf32>
    %c0_47 = arith.constant 0 : index
    %c0_48 = arith.constant 0 : index
    %c0_49 = arith.constant 0 : index
    %50 = vector.load %arg5[%c0_47, %c0_48, %c0_49] : memref<1x16x128xf32, #tpu.memory_space<vmem>>, vector<1x16x128xf32>
    %51 = vector.shape_cast %50 : vector<1x16x128xf32> to vector<16x128xf32>
    %52 = vector.shape_cast %49 : vector<16x128xf32> to vector<1x16x128xf32>
    tpu.vector_store %arg5[%c0_47, %c0_48, %c0_49], %52 {strides = array<i32>} : memref<1x16x128xf32, #tpu.memory_space<vmem>>, vector<1x16x128xf32>,
    %cst_50 = arith.constant dense<0xFF800000> : vector<128xf32>
    %53 = vector.multi_reduction <maximumf>, %49, %cst_50 [0] : vector<16x128xf32> to vector<128xf32>
    %54 = vector.shape_cast %53 : vector<128xf32> to vector<1x128xf32>
    %c0_51 = arith.constant 0 : index
    %c0_52 = arith.constant 0 : index
    %55 = vector.load %arg6[%c0_51, %c0_52] : memref<1x128xf32, #tpu.memory_space<vmem>>, vector<1x128xf32>
    tpu.vector_store %arg6[%c0_51, %c0_52], %54 {strides = array<i32>} : memref<1x128xf32, #tpu.memory_space<vmem>>, vector<1x128xf32>,
    return
  }
  func.func @transform_0(%arg0: i32, %arg1: i32) -> (i32, i32, i32) {
    %c0_i32 = arith.constant 0 : i32
    %c0_i32_0 = arith.constant 0 : i32
    return %arg0, %arg1, %c0_i32 : i32, i32, i32
  }
  func.func @transform_1(%arg0: i32, %arg1: i32) -> (i32, i32) {
    %c0_i32 = arith.constant 0 : i32
    %c0_i32_0 = arith.constant 0 : i32
    %c0_i32_1 = arith.constant 0 : i32
    return %c0_i32, %c0_i32_0 : i32, i32
  }
  func.func @transform_2(%arg0: i32, %arg1: i32) -> (i32, i32) {
    %c0_i32 = arith.constant 0 : i32
    %c0_i32_0 = arith.constant 0 : i32
    %c0_i32_1 = arith.constant 0 : i32
    return %c0_i32, %c0_i32_0 : i32, i32
  }
  func.func @transform_3(%arg0: i32, %arg1: i32) -> (i32, i32, i32) {
    %c0_i32 = arith.constant 0 : i32
    %c0_i32_0 = arith.constant 0 : i32
    return %arg0, %arg1, %c0_i32 : i32, i32, i32
  }
}

</mosaic_0001>

<bundles_post_ra>
// kernel: tpu_custom_call.1
= control target key start
LH: loop header
LB: loop body
LE: loop exit
PB: predicated region body
PF: predicated region fallthrough
CT: control target
= control target key end

     0   :  { %8 = vsyncpa [#allocation4], 0  ;;  %s991_s0 = inlined_call_operand.hbm [shape: f32[2,16,20], index: 0, kind: input, shape index: {}]   ;;  %s992_s1 = inlined_call_operand.hbm [shape: f32[20,128], index: 1, kind: input, shape index: {}]   ;;  %s993_s2 = inlined_call_operand.vmem [shape: f32[1,128], index: 2, kind: input, shape index: {}]   ;;  %s994_s3 = inlined_call_operand.hbm [shape: f32[2,16,128], index: 3, kind: output, shape index: {}]  }
   0x1   :  { %10 = vsyncpa [#allocation4 + $0x1], 0 }
   0x2   :  { %11 = vsyncpa [#allocation7], 0 }
   0x3   :  { %12 = vsyncpa [#allocation5], 0 }
   0x4   :  { %14 = vsyncpa [#allocation5 + $0x1], 0  ;;  %s775_s12 = smov 0   ;;  %s777_s13 = smov 0  }
   0x5   :  { %s779_s14 = smov 0   ;;  %s781_s15 = smov 0  }
   0x6   :  { %s783_s16 = smov 0   ;;  %s785_s17 = smov 0  }
   0x7 LB: > { %s491_s18 = sadd.s32 4294967295, %s745_s17   ;;  %s492_s19 = sadd.s32 4294967294, %s745_s17   ;;  %s745_s17 = sphi %s785_s17, %s20_s17   ;;  %s741_s16 = sphi %s783_s16, %s1016_s16   ;;  %s737_s15 = sphi %s781_s15, %s1015_s15   ;;  %s733_s14 = sphi %s779_s14, %s1014_s14   ;;  %s729_s13 = sphi %s777_s13, %s1013_s13   ;;  %s725_s12 = sphi %s775_s12, %s1012_s12  }
   0x8   : > { %p54_p0 = scmp.ne.s32.totalorder %s729_s13, %s725_s12  ;;  %p809_p1 = scmp.eq.s32.totalorder %s491_s18, 0 }
   0x9   : > { %p813_p2 = scmp.eq.s32.totalorder %s491_s18, 1  ;;  %p128_p3 = scmp.eq.s32.totalorder %s492_s19, 1 }
   0xa   : > { %p819_p4 = por %p809_p1, %p54_p0  ;;  %p493_p5 = scmp.ge.s32.totalorder %s745_s17, 1 }
   0xb   : > { %p824_p6 = por %p128_p3, %p54_p0  ;;  %p135_p7 = scmp.lt.s32.totalorder %s745_s17, 3 }
   0xc   : > { %s1000_s22 = scalar_select %p819_p4, 1, 0 }
   0xd   : > { %s1001_s23 = scalar_select %p824_p6, 1, 0 }
   0xe   : > { %p829_p8 = pnand %p493_p5, %p135_p7  ;;  %s747_s25 = smov [#allocation6]  }
   0xf   : > { %s147_s26 = sshll.u32 %s747_s25, 4  ;;  %s32_s28 = sadd.s32 1, %s741_s16  ;;  %s148_s26 = int_to_ptr.vmem [resolvable:$true] %s147_s26 }
  0x10   : > { %p537_p9 = pneg %p829_p8  ;;  %s618_s29 = scalar_lea.vmem %s148_s26, 384 }
  0x11   : > { %p619_p13 = scmp.ne.s32.totalorder %s148_s26, %s618_s29  ;;  %p626_p5 = scmp.lt.s32.totalorder %s148_s26, %s148_s26 }
  0x12   : > { %p838_p11 = pnand %p537_p9, %p809_p1  ;;  %p627_p7 = scmp.lt.s32.totalorder %s618_s29, %s618_s29 }
  0x14   : > { %p609_p12 = pneg %p838_p11  ;;  %p628_p6 = por %p627_p7, %p626_p5 }
  0x16   : > { %p621_p0 = pnand %p619_p13, %p609_p12 }
  0x18   : > { %p622_p3 = pneg %p621_p0 }
  0x1a   : > { %p629_p4 = pnand %p628_p6, %p622_p3 }
  0x1c   : > { %632 = shalt.err (!%p629_p4)
}
  0x1d   : > { %s996_s30 = smov 128   ;;  %s997_s4 = smov 8  }
  0x1e   : > { %540 = dma.hbm_to_vmem [thread:$0]  (!%p838_p11), %s992_s1, 384, %s148_s26, [#allocation7], %s996_s30, %s996_s30, %s997_s4  }
  0x1f   : > { %p34_p4 = scmp.ge.s32.totalorder %s32_s28, 2  ;;  %s41_s7 = sadd.s32 1, %s733_s14 }
  0x20   : > { %p48_p6 = scmp.ne.s32.totalorder %s733_s14, %s729_s13  ;;  %p49_p9 = scmp.eq.s32.totalorder %s745_s17, 0 }
  0x21   : > { %s1018_s28 = smov (%p34_p4, %s32_s28), 0  ;;  %p550_p0 = scmp.lt.s32.totalorder %s745_s17, 2 }
  0x22   : > { %p859_p12 = por %p49_p9, %p48_p6  ;;  %p865_p13 = por %p813_p2, %p48_p6 }
  0x23   : > { %s36_s10 = ssub.s32 %s741_s16, %s1018_s28  ;;  %s164_s11 = sand.u32 1, %s733_s14  }
  0x24   : > { %p39_p11 = scmp.eq.s32.totalorder %s36_s10, 0  ;;  %s496_s18 = sshll.u32 %s164_s11, 4 }
  0x25   : > { %s513_s25 = sshll.u32 %s741_s16, 8  ;;  %s168_s5 = scalar_lea.vmem [#allocation3], %s496_s18 }
  0x26   : > { %s874_s19 = scalar_select %p39_p11, %s733_s14, %s41_s7  }
  0x27   : > { %s176_s29 = scalar_lea.hbm %s991_s0, %s513_s25  ;;  %s177_s6 = sshll.u32 %s168_s5, 4  ;;  %s178_s6 = int_to_ptr.vmem [resolvable:$true] %s177_s6 }
  0x28   : > { %p882_p2 = pnand %p550_p0, %p859_p12  ;;  %s165_s30 = scalar_lea.sflag [#allocation4], %s164_s11 }
  0x29   : > { %s646_s10 = scalar_lea.vmem %s178_s6, 256  ;;  %s750_s7 = smov [#allocation3]  }
  0x2a   : > { %p635_p3 = pneg %p882_p2  ;;  %p647_p5 = scmp.ne.s32.totalorder %s178_s6, %s646_s10 }
  0x2b   : > { %s651_s4 = sshll.u32 %s750_s7, 4  ;;  %s652_s4 = int_to_ptr.vmem [resolvable:$false] %s651_s4 }
  0x2c   : > { %p649_p7 = pnand %p647_p5, %p635_p3  ;;  %s653_s25 = scalar_lea.vmem %s652_s4, 512 }
  0x2d   : > { %p654_p6 = scmp.lt.s32.totalorder %s178_s6, %s652_s4  ;;  %p655_p9 = scmp.lt.s32.totalorder %s653_s25, %s646_s10 }
  0x2e   : > { %p650_p4 = pneg %p649_p7 }
  0x2f   : > { %p656_p11 = por %p655_p9, %p654_p6 }
  0x31   : > { %p657_p10 = pnand %p656_p11, %p650_p4 }
  0x33   : > { %660 = shalt.err (!%p657_p10)
}
  0x34   : > { %s1007_s8 = smov 8   ;;  %s1008_s18 = smov 128  }
  0x35   : > { %544 = dma.hbm_to_vmem [thread:$0]  (!%p882_p2), %s176_s29, 256, %s178_s6, %s165_s30, %s1008_s18, %s1008_s18, %s1007_s8  }
  0x36   : > { %189 = sbr.rel (%p829_p8) target bundleno = 335 (0x14f), region = 32  ;;  %s896_s11 = sand.u32 (!%p829_p8), 1, %s729_s13  }
  0x37   : > { %s500_s4 = sshll.u32 (!%p829_p8), %s896_s11, 4  ;;  %s192_s26 = scalar_lea.sflag (!%p829_p8), [#allocation4], %s896_s11 }
  0x38   : > { %s195_s27 = scalar_lea.vmem (!%p829_p8), [#allocation3], %s500_s4  ;;  %p1009_p12 = scmp.ne.s32.totalorder (!%p829_p8), %s1000_s22, 0 }
  0x3b   : > { %712 = dma.done.wait (%p1009_p12), %s192_s26, 256  }
  0x3c   : > { %714 = vsyncadd (%p1009_p12), %s192_s26, 4294967040 }
  0x3d   : > { %716 = dma.done.wait (%p809_p1), [#allocation7], 384  }
  0x3e   : > { %718 = vsyncadd (%p809_p1), [#allocation7], 4294966912  ;;  %vm248_vm0 = vcmask 1043456   ;;  %vm241_vm1 = vcmask 162816   ;;  %v233_v0 = vld [vmem:[#allocation6 + $0x10] sm:$0xf] }
  0x3f   : > { %v232_v1 = vld [vmem:[#allocation6 + $0x8] sm:$0xff]  ;;  %520 = vmatprep.subr.msk.mxu0 %vm248_vm0, %v233_v0  ;;  %v229_v2 = vld [vmem:[%s195_s27] sm:$0xff]  ;;  %v751_v5 = vmov -inf   ;;  %v503_v6 = vld [vmem:[%s993_s2] ss:$0 sm:$0xff]  ;;  %s911_s24 = scalar_lea.vmem [#allocation8], %s500_s4 }
  0x40   : > { %521 = vmatpush3.msk.msra.mxu0 %vm248_vm0, %v233_v0  ;;  %v231_v3 = vld [vmem:[#allocation6] sm:$0xff]  ;;  %526 = vmatprep.mubr.msk.f32.mxu0 %vm241_vm1, %v229_v2  ;;  %v230_v4 = vld [vmem:[%s195_s27 + $0x8] sm:$0xff]  ;;  %228 = vst [vmem:[#allocation2] sm:$0x1] %v751_v5  ;;  %s514_s30 = sshll.u32 %s737_s15, 8  ;;  %s394_s29 = sshll.u32 %s911_s24, 4  ;;  %s942_s29 = int_to_ptr.vmem [resolvable:$true] %s394_s29 }
  0x41   : > { %522 = vmatprep.subr.mxu0 %v232_v1  ;;  %s940_s21 = scalar_lea.hbm %s994_s3, %s514_s30  ;;  %s379_s10 = scalar_lea.sflag [#allocation5], %s896_s11 }
  0x42   : > { %523 = vmatpush3.msra.mxu0 %v232_v1  ;;  %s661_s15 = scalar_lea.vmem %s942_s29, 256  ;;  %s752_s7 = smov [#allocation8]  }
  0x43   : > { %524 = vmatprep.subr.mxu0 %v231_v3  ;;  %p662_p1 = scmp.ne.s32.totalorder %s942_s29, %s661_s15  ;;  %s665_s25 = sshll.u32 %s752_s7, 4  ;;  %s666_s25 = int_to_ptr.vmem [resolvable:$false] %s665_s25 }
  0x44   : > { %525 = vmatpush3.msra.mxu0 %v231_v3  ;;  %s667_s8 = scalar_lea.vmem %s666_s25, 512  ;;  %p668_p0 = scmp.lt.s32.totalorder %s942_s29, %s666_s25 }
  0x45   : > { %527 = vmatmul.mubr.msk.f32.vlgmr.msra.gmra.mxu0 %vm241_vm1, %v230_v4  ;;  %p663_p8 = pnand %p662_p1, %p865_p13  ;;  %p669_p2 = scmp.lt.s32.totalorder %s667_s8, %s661_s15 }
  0x47   : > { %v507_v28 = vld [vmem:[#allocation2] ss:$0 sm:$0xff]  ;;  %p664_p10 = pneg %p663_p8  ;;  %p670_p3 = por %p669_p2, %p668_p0 }
  0x49   : > { %p671_p5 = pnand %p670_p3, %p664_p10 }
 0x105   : > { %v528_v7 = vpop.f32.mrf.mxu0 }
 0x106   : > { %v324_v8 = vadd.f32 %v528_v7, %v503_v6 }
 0x107   : > { %v318_v9 = vpop.f32.mrf.mxu0 }
 0x108   : > { %328 = vst [vmem:[%s911_s24 + $0x8] sm:$0xff] %v324_v8  ;;  %v319_v10 = vadd.f32 %v503_v6, %v318_v9 }
 0x10a   : > { %327 = vst [vmem:[%s911_s24] sm:$0xff] %v319_v10 }
 0x10f   : > { %v330_v11 = vld [vmem:[%s911_s24 + $0x9] sm:$0x7f] }
 0x110   : > { %v332_v12 = vld [vmem:[%s911_s24 + $0x8] sm:$0x7f] }
 0x111   : > { %v334_v13 = vmax.f32 %v330_v11, %v332_v12  ;;  %v329_v14 = vld [vmem:[%s911_s24 + $0x1] sm:$0xff] }
 0x112   : > { %v333_v15 = vmax.f32 %v329_v14, %v319_v10 }
 0x113   : > { %336 = vst [vmem:[%s911_s24 + $0x9] sm:$0x7f] %v334_v13 }
 0x114   : > { %335 = vst [vmem:[%s911_s24 + $0x1] sm:$0xff] %v333_v15 }
 0x11a   : > { %v338_v16 = vld [vmem:[%s911_s24 + $0xa] sm:$0x3f] }
 0x11b   : > { %v337_v17 = vld [vmem:[%s911_s24 + $0x2] sm:$0xff] }
 0x11c   : > { %v339_v18 = vld [vmem:[%s911_s24] sm:$0xff]  ;;  %v340_v19 = vld [vmem:[%s911_s24 + $0x8] sm:$0x3f] }
 0x11d   : > { %v341_v20 = vmax.f32 %v337_v17, %v339_v18  ;;  %v342_v21 = vmax.f32 %v338_v16, %v340_v19 }
 0x11f   : > { %343 = vst [vmem:[%s911_s24 + $0x2] sm:$0xff] %v341_v20  ;;  %344 = vst [vmem:[%s911_s24 + $0xa] sm:$0x3f] %v342_v21 }
 0x126   : > { %v347_v22 = vld [vmem:[%s911_s24] sm:$0xff]  ;;  %v346_v24 = vld [vmem:[%s911_s24 + $0xc] sm:$0xf]  ;;  %v348_v25 = vld [vmem:[%s911_s24 + $0x8] sm:$0xf] }
 0x127   : > { %v345_v23 = vld [vmem:[%s911_s24 + $0x4] sm:$0xff]  ;;  %v350_v27 = vmax.f32 %v346_v24, %v348_v25 }
 0x128   : > { %v349_v26 = vmax.f32 %v345_v23, %v347_v22 }
 0x129   : > { %352 = vst [vmem:[%s911_s24 + $0xc] sm:$0xf] %v350_v27 }
 0x12a   : > { %351 = vst [vmem:[%s911_s24 + $0x4] sm:$0xff] %v349_v26 }
 0x131   : > { %v354_v29 = vld [vmem:[%s911_s24] sm:$0xff]  ;;  %v353_v30 = vld [vmem:[%s911_s24 + $0x8] sm:$0xff] }
 0x132   : > { %v366_v31 = vmax.f32 %v354_v29, %v507_v28  ;;  %v355_v32 = vmax.f32 %v353_v30, %v354_v29 }
 0x134   : > { %368 = vst [vmem:[%s911_s24] sm:$0xff] %v366_v31  ;;  %v367_v33 = vmax.f32 %v355_v32, %v507_v28 }
 0x136   : > { %369 = vst [vmem:[%s911_s24 + $0x8] sm:$0xff] %v367_v33  ;;  %v370_v34 = vmax.f32 %v366_v31, %v367_v33 }
 0x137   : > { %674 = shalt.err (!%p671_p5)
}
 0x138   : > { %s675_s18 = scalar_lea.hbm %s940_s21, 256  ;;  %s679_s27 = scalar_lea.hbm %s994_s3, 512 }
 0x139   : > { %p676_p7 = scmp.ne.s32.totalorder %s940_s21, %s675_s18  ;;  %p680_p9 = scmp.lt.s32.totalorder %s940_s21, %s994_s3 }
 0x13a   : > { %p681_p11 = scmp.lt.s32.totalorder %s679_s27, %s675_s18 }
 0x13b   : > { %p677_p4 = pnand %p676_p7, %p865_p13 }
 0x13c   : > { %p682_p12 = por %p681_p11, %p680_p9 }
 0x13d   : > { %p678_p6 = pneg %p677_p4 }
 0x13f   : > { %p683_p1 = pnand %p682_p12, %p678_p6 }
 0x141   : > { %686 = shalt.err (!%p683_p1)
}
 0x142   : > { %s753_s24 = smov 128   ;;  %s754_s30 = smov 8   ;;  %v371_v35 = vrot.slane %v370_v34, 4 }
 0x143   : > { %535 = dma.vmem_to_hbm [thread:$0]  (%p865_p13), %s942_s29, 256, %s940_s21, %s379_s10, %s753_s24, %s753_s24, %s754_s30  }
 0x144   : > { %v372_v36 = vmax.f32 %v370_v34, %v371_v35 }
 0x146   : > { %v373_v37 = vrot.slane %v372_v36, 2 }
 0x148   : > { %v374_v38 = vmax.f32 %v372_v36, %v373_v37 }
 0x14a   : > { %v375_v39 = vrot.slane %v374_v38, 1 }
 0x14c   : > { %v376_v40 = vmax.f32 %v374_v38, %v375_v39 }
 0x14e   : > { %377 = vst [vmem:[#allocation2] sm:$0x1] %v376_v40 }
 0x14f PF: > { %s409_s5 = sand.u32 1, %s725_s12   ;;  %p1010_p8 = scmp.ne.s32.totalorder %s1001_s23, 0 }
 0x150   : > { %p1011_p10 = scmp.ge.s32.totalorder %s745_s17, 2  ;;  %s410_s6 = scalar_lea.sflag [#allocation5], %s409_s5 }
 0x152   : > { %p546_p0 = pnand %p1011_p10, %p1010_p8 }
 0x154   : > { %p547_p2 = pneg %p546_p0 }
 0x156   : > { %720 = dma.done.wait (%p547_p2), %s410_s6, 256  }
 0x157   : > { %722 = vsyncadd (%p547_p2), %s410_s6, 4294967040  ;;  %s20_s17 = sadd.s32 1, %s745_s17   ;;  %s1012_s12 = smov %s729_s13 }
 0x158   : > { %p17_p13 = scmp.ge.s32.totalorder %s20_s17, 4   ;;  %s1013_s13 = smov %s733_s14 }
 0x159   : > { %s1014_s14 = smov %s874_s19  ;;  %s1015_s15 = smov %s741_s16 }
 0x15a   : > { %s1016_s16 = smov %s1018_s28  ;;  %19 = sbr.rel (!%p17_p13) target bundleno = 7 (0x7), region = 85 }
 0x15f   :  { %415 = vsyncpa [#allocation4], 1 }
 0x160   :  { %417 = vsyncpa [#allocation4 + $0x1], 1 }
 0x161   :  { %418 = vsyncpa [#allocation7], 1 }
 0x162   :  { %419 = vsyncpa [#allocation5], 1 }
 0x163   :  { %421 = vsyncpa [#allocation5 + $0x1], 1 }

</bundles_post_ra>
